<compile_context>
chip_gen: v7x
topology: tpu7x:2x2x1
jax: 0.10.0
libtpu: 0.0.40
codegen_flags: <defaults>
</compile_context>

<pallas_src>
import functools
import math

import jax
import jax.numpy as jnp
from jax.experimental import pallas as pl
from jax.experimental.pallas import tpu as pltpu


# ----------------------------- kernels --------------------------------------


def _pe_add_kernel(x_ref, pe_ref, out_ref):
    # Pure eval-mode path: out = x + pe (all refs are [TS, B*D] tiles).
    out_ref[...] = x_ref[...] + pe_ref[...]


def _pe_add_dropout_kernel(x_ref, pe_ref, bits_ref, out_ref, *,
                           threshold: int, scale: float):
    # Training path: out = where(bits >= threshold, (x + pe) * 1/(1-p), 0)
    y = x_ref[...] + pe_ref[...]
    keep = bits_ref[...] >= jnp.uint32(threshold)
    y_scaled = y * jnp.asarray(scale, dtype=y.dtype)
    out_ref[...] = jnp.where(keep, y_scaled, jnp.zeros_like(y))


# --------------------------- setup (plain JAX) -------------------------------


def make_positional_encoding_table(max_len: int, d_model: int) -> jnp.ndarray:
    """Replicates the buffer built in PositionalEncoding.__init__."""
    position = jnp.arange(max_len, dtype=jnp.float32)[:, None]                 # [L, 1]
    div_term = jnp.exp(
        jnp.arange(0, d_model, 2, dtype=jnp.float32) * (-math.log(10000.0) / d_model)
    )
    pe = jnp.zeros((max_len, d_model), dtype=jnp.float32)
    pe = pe.at[:, 0::2].set(jnp.sin(position * div_term))
    if d_model % 2 != 0:
        pe = pe.at[:, 1::2].set(jnp.cos(position * div_term)[:, :-1])
    else:
        pe = pe.at[:, 1::2].set(jnp.cos(position * div_term))
    return pe  # [max_len, d_model]


def _dropout_threshold(p: float) -> int:
    """uint32 threshold so that P(bits >= threshold) == 1 - p."""
    return min(int(round(p * float(2 ** 32))), 2 ** 32 - 1)


def _pick_row_tile(n_rows: int, row_bytes: int,
                   target_bytes: int = 2 * 1024 * 1024) -> int:
    """Rows per tile: ~2 MiB per buffer (fits v7x 64 MiB VMEM with 4 streams
    double-buffered), multiple of 8 for clean (8, 128) tiling."""
    rows = max(1, target_bytes // max(1, row_bytes))
    if rows >= n_rows:
        return n_rows
    return max(8, (rows // 8) * 8)


# ------------------------------ wrapper --------------------------------------


def positional_encoding_forward(x: jnp.ndarray,
                                pe_table: jnp.ndarray,
                                *,
                                dropout_p: float = 0.1,
                                training: bool = True,
                                rng_key=None) -> jnp.ndarray:
    """x: [seq_len, batch, d_model] -> [seq_len, batch, d_model]."""
    S, B, D = x.shape
    BD = B * D
    dtype = x.dtype
    p = float(dropout_p) if training else 0.0

    # Lane-dense 2D layout: fold batch into the last axis so the last block
    # dim is B*D (full width; a multiple of 128 for realistic d_model).
    x2 = x.reshape(S, BD)
    pe2 = jnp.tile(pe_table[:S, :].astype(dtype), (1, B))        # [S, B*D]

    itemsize = jnp.dtype(dtype).itemsize
    ts = _pick_row_tile(S, BD * itemsize)
    grid = (pl.cdiv(S, ts),)
    blk = pl.BlockSpec((ts, BD), lambda i: (i, 0))

    cparams = pltpu.CompilerParams(
        dimension_semantics=("parallel",),
        vmem_limit_bytes=64 * 1024 * 1024,
    )

    if p > 0.0:
        if rng_key is None:
            rng_key = jax.random.PRNGKey(0)
        # Uniform uint32 bits generated outside the kernel (portable; no
        # TPU-only PRNG primitives). Streamed through the same BlockSpec.
        bits = jax.random.bits(rng_key, (S, BD), dtype=jnp.uint32)
        kernel = functools.partial(
            _pe_add_dropout_kernel,
            threshold=_dropout_threshold(p),
            scale=1.0 / (1.0 - p),
        )
        out2 = pl.pallas_call(
            kernel,
            out_shape=jax.ShapeDtypeStruct((S, BD), dtype),
            grid=grid,
            in_specs=[blk, blk, blk],
            out_specs=blk,
            compiler_params=cparams,
        )(x2, pe2, bits)
    else:
        out2 = pl.pallas_call(
            _pe_add_kernel,
            out_shape=jax.ShapeDtypeStruct((S, BD), dtype),
            grid=grid,
            in_specs=[blk, blk],
            out_specs=blk,
            compiler_params=cparams,
        )(x2, pe2)

    return out2.reshape(S, B, D)


# ------------------------------- demo ----------------------------------------


if __name__ == "__main__":
    # Small shapes consistent with the module: [seq_len, batch, d_model].
    SEQ, BATCH, D_MODEL = 8, 2, 64          # B*D = 128 -> lane-dense output
    MAX_LEN = 64
    DROPOUT_P = 0.1

    key = jax.random.PRNGKey(0)
    x = jax.random.normal(key, (SEQ, BATCH, D_MODEL), dtype=jnp.float32)
    pe_table = make_positional_encoding_table(MAX_LEN, D_MODEL)

    ref_eval = x + pe_table[:SEQ, :][:, None, :]

    # 1) Eval mode (dropout off): kernel output must equal x + pe exactly.
    out_eval = positional_encoding_forward(x, pe_table, dropout_p=DROPOUT_P,
                                           training=False)
    out_eval = jax.block_until_ready(out_eval)
    assert out_eval.shape == (SEQ, BATCH, D_MODEL)
    assert jnp.allclose(out_eval, ref_eval, atol=1e-5, rtol=1e-5), "PE-add mismatch"

    # 2) Training mode: dropout mask derived from externally supplied bits, so
    #    the reference mask is reproducible and the check is exact.
    drop_key = jax.random.PRNGKey(1234)
    out_train = positional_encoding_forward(x, pe_table, dropout_p=DROPOUT_P,
                                            training=True, rng_key=drop_key)
    out_train = jax.block_until_ready(out_train)
    assert out_train.shape == (SEQ, BATCH, D_MODEL)

    bits_ref = jax.random.bits(drop_key, (SEQ, BATCH * D_MODEL), dtype=jnp.uint32)
    keep_ref = (bits_ref >= jnp.uint32(_dropout_threshold(DROPOUT_P))
                ).reshape(SEQ, BATCH, D_MODEL)
    ref_train = jnp.where(keep_ref, ref_eval / (1.0 - DROPOUT_P), 0.0)
    assert jnp.allclose(out_train, ref_train, atol=1e-5, rtol=1e-5), \
        "dropout semantics mismatch"

    print("KERNEL_OK")
</pallas_src>

<mosaic_0001>
module attributes {stable_mosaic.version = 11 : i64} {
  func.func @_pe_add_kernel(%arg0: i32, %arg1: memref<8x128xf32, #tpu.memory_space<vmem>>, %arg2: memref<8x128xf32, #tpu.memory_space<vmem>>, %arg3: memref<8x128xf32, #tpu.memory_space<vmem>>) attributes {dimension_semantics = [#tpu.dimension_semantics<parallel>], iteration_bounds = array<i64: 1>, scalar_prefetch = 0 : i64, scratch_operands = 0 : i64, tpu.core_type = #tpu.core_type<tc>, window_params = [{transform_indices = @transform_0, window_bounds = array<i64: 8, 128>}, {transform_indices = @transform_1, window_bounds = array<i64: 8, 128>}, {transform_indices = @transform_2, window_bounds = array<i64: 8, 128>}]} {
    %c0 = arith.constant 0 : index
    %c0_0 = arith.constant 0 : index
    %0 = vector.load %arg1[%c0, %c0_0] : memref<8x128xf32, #tpu.memory_space<vmem>>, vector<8x128xf32>
    %c0_1 = arith.constant 0 : index
    %c0_2 = arith.constant 0 : index
    %1 = vector.load %arg2[%c0_1, %c0_2] : memref<8x128xf32, #tpu.memory_space<vmem>>, vector<8x128xf32>
    %2 = arith.addf %0, %1 : vector<8x128xf32>
    %c0_3 = arith.constant 0 : index
    %c0_4 = arith.constant 0 : index
    %3 = vector.load %arg3[%c0_3, %c0_4] : memref<8x128xf32, #tpu.memory_space<vmem>>, vector<8x128xf32>
    tpu.vector_store %arg3[%c0_3, %c0_4], %2 {strides = array<i32>} : memref<8x128xf32, #tpu.memory_space<vmem>>, vector<8x128xf32>,
    return
  }
  func.func @transform_0(%arg0: i32) -> (i32, i32) {
    %c0_i32 = arith.constant 0 : i32
    %c0_i32_0 = arith.constant 0 : i32
    return %arg0, %c0_i32 : i32, i32
  }
  func.func @transform_1(%arg0: i32) -> (i32, i32) {
    %c0_i32 = arith.constant 0 : i32
    %c0_i32_0 = arith.constant 0 : i32
    return %arg0, %c0_i32 : i32, i32
  }
  func.func @transform_2(%arg0: i32) -> (i32, i32) {
    %c0_i32 = arith.constant 0 : i32
    %c0_i32_0 = arith.constant 0 : i32
    return %arg0, %c0_i32 : i32, i32
  }
}

</mosaic_0001>

<bundles_post_ra>
// kernel: tpu_custom_call.1
= control target key start
LH: loop header
LB: loop body
LE: loop exit
PB: predicated region body
PF: predicated region fallthrough
CT: control target
= control target key end

     0   :  { %7 = vsyncpa [#allocation3], 0  ;;  %s185_s0 = inlined_call_operand.hbm [shape: f32[8,128], index: 0, kind: input, shape index: {}]   ;;  %s186_s1 = inlined_call_operand.hbm [shape: f32[8,128], index: 1, kind: input, shape index: {}]   ;;  %s187_s2 = inlined_call_operand.hbm [shape: f32[8,128], index: 2, kind: output, shape index: {}]  }
   0x1   :  { %8 = vsyncpa [#allocation6], 0 }
   0x2   :  { %9 = vsyncpa [#allocation4], 0  ;;  %s131_s9 = smov [#allocation2]   ;;  %s132_s11 = smov [#allocation5]  }
   0x3   :  { %s16_s10 = sshll.u32 %s131_s9, 4  ;;  %s26_s12 = sshll.u32 %s132_s11, 4  ;;  %s17_s10 = int_to_ptr.vmem [resolvable:$true] %s16_s10  ;;  %s27_s12 = int_to_ptr.vmem [resolvable:$true] %s26_s12 }
   0x4   :  { %s59_s15 = scalar_lea.hbm %s185_s0, 128 }
   0x5   :  { %p60_p0 = scmp.ne.s32.totalorder %s185_s0, %s59_s15  ;;  %p63_p1 = scmp.lt.u32.totalorder %s59_s15, %s185_s0 }
   0x7   :  { %p65_p2 = pnand %p63_p1, %p60_p0 }
   0x9   :  { %68 = shalt.err (!%p65_p2)
}
   0xa   :  { %s69_s20 = scalar_lea.vmem %s17_s10, 128  ;;  %p74_p4 = scmp.lt.s32.totalorder %s17_s10, %s17_s10 }
   0xb   :  { %p70_p3 = scmp.ne.s32.totalorder %s17_s10, %s69_s20  ;;  %p75_p5 = scmp.lt.s32.totalorder %s69_s20, %s69_s20 }
   0xd   :  { %p76_p6 = por %p75_p5, %p74_p4 }
   0xf   :  { %p77_p7 = pnand %p76_p6, %p70_p3 }
  0x11   :  { %80 = shalt.err (!%p77_p7)
}
  0x12   :  { %19 = dma.hbm_to_vmem [thread:$0]  %s185_s0, 128, %s17_s10, [#allocation3]  }
  0x13   :  { %s81_s25 = scalar_lea.hbm %s186_s1, 128 }
  0x14   :  { %p82_p8 = scmp.ne.s32.totalorder %s186_s1, %s81_s25  ;;  %p85_p9 = scmp.lt.u32.totalorder %s81_s25, %s186_s1 }
  0x16   :  { %p87_p10 = pnand %p85_p9, %p82_p8 }
  0x18   :  { %90 = shalt.err (!%p87_p10)
}
  0x19   :  { %s91_s30 = scalar_lea.vmem %s27_s12, 128  ;;  %p96_p12 = scmp.lt.s32.totalorder %s27_s12, %s27_s12 }
  0x1a   :  { %p92_p11 = scmp.ne.s32.totalorder %s27_s12, %s91_s30  ;;  %p97_p13 = scmp.lt.s32.totalorder %s91_s30, %s91_s30 }
  0x1c   :  { %p98_p0 = por %p97_p13, %p96_p12 }
  0x1e   :  { %p99_p1 = pnand %p98_p0, %p92_p11 }
  0x20   :  { %102 = shalt.err (!%p99_p1)
}
  0x21   :  { %29 = dma.hbm_to_vmem [thread:$0]  %s186_s1, 128, %s27_s12, [#allocation6]  }
  0x22   :  { %125 = dma.done.wait [#allocation3], 128  }
  0x23   :  { %126 = vsyncadd [#allocation3], 4294967168 }
  0x24   :  { %127 = dma.done.wait [#allocation6], 128  }
  0x25   :  { %128 = vsyncadd [#allocation6], 4294967168  ;;  %s133_s4 = smov [#allocation7]   ;;  %v36_v0 = vld [vmem:[#allocation2] sm:$0xff]  ;;  %v37_v1 = vld [vmem:[#allocation5] sm:$0xff] }
  0x26   :  { %s46_s5 = sshll.u32 %s133_s4, 4  ;;  %v38_v2 = vadd.f32 %v37_v1, %v36_v0  ;;  %s47_s5 = int_to_ptr.vmem [resolvable:$true] %s46_s5 }
  0x27   :  { %s103_s6 = scalar_lea.vmem %s47_s5, 128  ;;  %p108_p3 = scmp.lt.s32.totalorder %s47_s5, %s47_s5 }
  0x28   :  { %39 = vst [vmem:[#allocation7] sm:$0xff] %v38_v2  ;;  %p104_p2 = scmp.ne.s32.totalorder %s47_s5, %s103_s6  ;;  %p109_p4 = scmp.lt.s32.totalorder %s103_s6, %s103_s6 }
  0x2a   :  { %p110_p5 = por %p109_p4, %p108_p3 }
  0x2c   :  { %p111_p6 = pnand %p110_p5, %p104_p2 }
  0x2e   :  { %114 = shalt.err (!%p111_p6)
}
  0x2f   :  { %s115_s8 = scalar_lea.hbm %s187_s2, 128 }
  0x30   :  { %p116_p7 = scmp.ne.s32.totalorder %s187_s2, %s115_s8  ;;  %p119_p8 = scmp.lt.u32.totalorder %s115_s8, %s187_s2 }
  0x32   :  { %p121_p9 = pnand %p119_p8, %p116_p7 }
  0x34   :  { %124 = shalt.err (!%p121_p9)
}
  0x35   :  { %49 = dma.vmem_to_hbm [thread:$0]  %s47_s5, 128, %s187_s2, [#allocation4]  }
  0x36   :  { %129 = dma.done.wait [#allocation4], 128  }
  0x37   :  { %130 = vsyncadd [#allocation4], 4294967168 }
  0x38   :  { %53 = vsyncpa [#allocation3], 1 }
  0x39   :  { %54 = vsyncpa [#allocation6], 1 }
  0x3a   :  { %55 = vsyncpa [#allocation4], 1 }

</bundles_post_ra>
